<compile_context>
chip_gen: v7x
topology: tpu7x:2x2x1
jax: 0.10.0
libtpu: 0.0.40
codegen_flags: <defaults>
</compile_context>

<pallas_src>
import functools

import jax
import jax.numpy as jnp
from jax.experimental import pallas as pl
from jax.experimental.pallas import tpu as pltpu

_MiB = 1024 * 1024


def _round_up(x, m):
    return (x + m - 1) // m * m


def _vmem_cap_bytes():
    """Generation-aware VMEM budget for this kernel's blocks."""
    try:
        phys = pltpu.get_tpu_info().vmem_capacity_bytes
    except Exception:
        return 48 * _MiB  # conservative fallback: safe even on v7x (64 MiB VMEM)
    if phys <= 64 * _MiB:  # v7x-class TensorCore
        return 48 * _MiB
    return 96 * _MiB       # v5e / v6e (128 MiB physical)


def _pick_tk(K, target=512):
    """K-tile: a multiple of 128 that divides K (lane-aligned X blocks, clean MXU
    cadence), preferring 256-multiples (v6e/v7x MXU depth); else the full K."""
    if K <= target:
        return K
    for tk in (2048, 1024, 512, 256, 1536, 768, 384, 128):
        if tk <= target and K % tk == 0:
            return tk
    return K  # no 128-multiple divisor of K -> single full-K block


def _pick_tn(C_pad, target=256):
    """Class-tile: divides C_pad (a multiple of 128), as large as target allows."""
    if C_pad <= target:
        return C_pad
    for tn in (512, 384, 256, 128):
        if tn <= target and C_pad % tn == 0:
            return tn
    return 128


def _linear_kernel(x_ref, w_ref, b_ref, o_ref, acc_ref):
    # x_ref: (tm, tk)  w_ref: (tk, tn)  b_ref: (1, tn)  o_ref: (tm, tn)
    # acc_ref: f32 (tm, tn) scratch, resident across the K (reduction) grid axis.
    k = pl.program_id(2)

    @pl.when(k == 0)
    def _():
        # Fold the bias into the accumulator init (removes an epilogue VPU add).
        acc_ref[...] = jnp.broadcast_to(
            b_ref[...].astype(jnp.float32), acc_ref.shape
        )

    # Cast the X block in-kernel (no wrapper-side HBM pass); no-op when dtypes match.
    acc_ref[...] += jnp.dot(
        x_ref[...].astype(w_ref.dtype),
        w_ref[...],
        preferred_element_type=jnp.float32,
    )

    @pl.when(k == pl.num_programs(2) - 1)
    def _():
        o_ref[...] = acc_ref[...].astype(o_ref.dtype)


def prepare_cls_params(weight, bias, *, param_dtype=None):
    """One-time parameter prep (call ONCE at setup, not per step).

    weight: (nb_classes, sz_embed) PyTorch nn.Linear layout; bias: (nb_classes,).
    Returns (w_t, b2, nb_classes):
        w_t: (sz_embed, C_pad)  pre-transposed, class-dim padded weight
        b2 : (1, C_pad) f32     padded bias
    C_pad = round_up(nb_classes, 128) keeps output stores lane-dense with minimal
    padded work. param_dtype=jnp.bfloat16 halves the dominant weight HBM stream on
    ALL generations (v5e/v6e/v7x MXUs are bf16-native); accumulation stays f32.
    """
    weight = jnp.asarray(weight)
    bias = jnp.asarray(bias)
    C, K = weight.shape
    C_pad = _round_up(C, 128)
    if param_dtype is None:
        param_dtype = weight.dtype
    w_t = jnp.zeros((K, C_pad), param_dtype).at[:, :C].set(
        weight.T.astype(param_dtype)
    )
    b2 = jnp.zeros((1, C_pad), jnp.float32).at[:, :C].set(bias.astype(jnp.float32))
    return w_t, b2, C


@functools.partial(jax.jit, static_argnames=("nb_classes", "tm", "tn", "tk"))
def cls_forward(x, w_t, b2, *, nb_classes, tm=1024, tn=256, tk=None):
    """x: (N, sz_embed); w_t/b2 from prepare_cls_params. Returns (N, nb_classes)."""
    N, K = x.shape
    Kw, C_pad = w_t.shape
    assert Kw == K, "weight / input embed dim mismatch"
    assert C_pad % 128 == 0 and C_pad >= nb_classes

    out_dtype = x.dtype
    x_item = jnp.dtype(x.dtype).itemsize
    w_item = jnp.dtype(w_t.dtype).itemsize
    out_item = jnp.dtype(out_dtype).itemsize

    cap = _vmem_cap_bytes()

    if tk is None:
        tk = _pick_tk(K, target=1024 if cap > 48 * _MiB else 512)
    assert K % tk == 0, "tk must divide sz_embed"

    tn_eff = _pick_tn(C_pad, target=tn)
    assert C_pad % tn_eff == 0

    # Row tile: as large as the batch allows (weight-streaming roofline wants
    # several hundred rows), rounded to the sublane packing of x's dtype
    # (f32 -> 8, bf16 -> 16, int8/fp8 -> 32).
    sub = max(8, 32 // x_item)
    tm_eff = _round_up(min(tm, _round_up(N, sub)), sub)

    def est_vmem(tm_):
        # double-buffered in/out blocks + f32 accumulator scratch
        return (
            2 * (tm_ * tk * x_item + tk * tn_eff * w_item + tn_eff * 4)
            + 2 * tm_ * tn_eff * out_item
            + tm_ * tn_eff * 4
        )

    # Clamp the row tile so blocks stay well inside the per-generation budget
    # (mainly matters on v7x's 64 MiB VMEM when tm/tk/tn are raised).
    while est_vmem(tm_eff) > cap // 2 and tm_eff > sub:
        tm_eff = max(sub, _round_up(tm_eff // 2, sub))

    vmem_limit = int(min(max(2 * est_vmem(tm_eff), 32 * _MiB), cap))

    n_row = pl.cdiv(N, tm_eff)
    n_col = C_pad // tn_eff
    grid = (n_row, n_col, K // tk)

    # Advisory cost: include re-reads (X streamed once per class tile, W once per
    # row tile) so XLA's scheduling around the custom call isn't misled.
    cost = pl.CostEstimate(
        flops=2 * N * K * C_pad,
        transcendentals=0,
        bytes_accessed=(
            n_col * N * K * x_item
            + n_row * K * C_pad * w_item
            + n_row * C_pad * 4
            + N * C_pad * out_item
        ),
    )

    out = pl.pallas_call(
        _linear_kernel,
        out_shape=jax.ShapeDtypeStruct((N, C_pad), out_dtype),
        grid_spec=pltpu.PrefetchScalarGridSpec(
            num_scalar_prefetch=0,
            grid=grid,
            in_specs=[
                pl.BlockSpec((tm_eff, tk), lambda i, j, k: (i, k)),  # X rows x K
                pl.BlockSpec((tk, tn_eff), lambda i, j, k: (k, j)),  # W^T K x classes
                pl.BlockSpec((1, tn_eff), lambda i, j, k: (0, j)),   # bias classes
            ],
            out_specs=pl.BlockSpec((tm_eff, tn_eff), lambda i, j, k: (i, j)),
            scratch_shapes=[pltpu.VMEM((tm_eff, tn_eff), jnp.float32)],
        ),
        compiler_params=pltpu.CompilerParams(
            dimension_semantics=("parallel", "parallel", "arbitrary"),
            vmem_limit_bytes=vmem_limit,
        ),
        cost_estimate=cost,
    )(x, w_t, b2)

    if C_pad == nb_classes:
        return out
    # TODO(synk): downstream consumers that can mask padded logits should take the
    # padded (N, C_pad) output directly and skip this extra HBM copy.
    return out[:, :nb_classes]


if __name__ == "__main__":
    key = jax.random.PRNGKey(0)
    k_x, k_w, k_b = jax.random.split(key, 3)

    batch = 8
    sz_embed = 32
    nb_classes = 10

    # nn.Linear default init: U(-1/sqrt(in), 1/sqrt(in))
    bound = 1.0 / (sz_embed ** 0.5)
    weight = jax.random.uniform(k_w, (nb_classes, sz_embed), jnp.float32, -bound, bound)
    bias = jax.random.uniform(k_b, (nb_classes,), jnp.float32, -bound, bound)
    x = jax.random.normal(k_x, (batch, sz_embed), jnp.float32)

    ref = x @ weight.T + bias

    # f32 parameter path.
    w_t, b2, _ = prepare_cls_params(weight, bias)
    out = jax.block_until_ready(cls_forward(x, w_t, b2, nb_classes=nb_classes))
    assert out.shape == (batch, nb_classes)
    # MXU default precision for f32 operands may route through bf16 passes.
    assert jnp.allclose(out, ref, atol=2e-2, rtol=2e-2), float(
        jnp.max(jnp.abs(out - ref))
    )

    # bf16 parameter path (halved weight stream; f32 accumulation in-kernel).
    w_t_bf, b2_bf, _ = prepare_cls_params(weight, bias, param_dtype=jnp.bfloat16)
    out_bf = jax.block_until_ready(cls_forward(x, w_t_bf, b2_bf, nb_classes=nb_classes))
    assert out_bf.shape == (batch, nb_classes)
    assert jnp.allclose(out_bf, ref, atol=5e-2, rtol=5e-2), float(
        jnp.max(jnp.abs(out_bf - ref))
    )

    print("KERNEL_OK")
</pallas_src>

<mosaic_0001>
module attributes {stable_mosaic.version = 11 : i64} {
  func.func @_linear_kernel(%arg0: i32, %arg1: i32, %arg2: i32, %arg3: memref<8x32xf32, #tpu.memory_space<vmem>>, %arg4: memref<32x128xf32, #tpu.memory_space<vmem>>, %arg5: memref<1x128xf32, #tpu.memory_space<vmem>>, %arg6: memref<8x128xf32, #tpu.memory_space<vmem>>, %arg7: memref<8x128xf32, #tpu.memory_space<vmem>>) attributes {dimension_semantics = [#tpu.dimension_semantics<parallel>, #tpu.dimension_semantics<parallel>, #tpu.dimension_semantics<arbitrary>], iteration_bounds = array<i64: 1, 1, 1>, scalar_prefetch = 0 : i64, scratch_operands = 1 : i64, tpu.core_type = #tpu.core_type<tc>, window_params = [{transform_indices = @transform_0, window_bounds = array<i64: 8, 32>}, {transform_indices = @transform_1, window_bounds = array<i64: 32, 128>}, {transform_indices = @transform_2, window_bounds = array<i64: 1, 128>}, {transform_indices = @transform_3, window_bounds = array<i64: 8, 128>}]} {
    %c0_i32 = arith.constant 0 : i32
    %0 = arith.cmpi eq, %arg2, %c0_i32 : i32
    %1 = arith.extui %0 : i1 to i32
    %c0_i32_0 = arith.constant 0 : i32
    %2 = arith.cmpi ne, %1, %c0_i32_0 : i32
    scf.if %2 {
      %c0_10 = arith.constant 0 : index
      %c0_11 = arith.constant 0 : index
      %12 = vector.load %arg5[%c0_10, %c0_11] : memref<1x128xf32, #tpu.memory_space<vmem>>, vector<1x128xf32>
      %13 = vector.shape_cast %12 : vector<1x128xf32> to vector<1x128xf32>
      %14 = vector.broadcast %13 : vector<1x128xf32> to vector<8x128xf32>
      %c0_12 = arith.constant 0 : index
      %c0_13 = arith.constant 0 : index
      %15 = vector.load %arg7[%c0_12, %c0_13] : memref<8x128xf32, #tpu.memory_space<vmem>>, vector<8x128xf32>
      tpu.vector_store %arg7[%c0_12, %c0_13], %14 {strides = array<i32>} : memref<8x128xf32, #tpu.memory_space<vmem>>, vector<8x128xf32>,
    } else {
    }
    %c0 = arith.constant 0 : index
    %c0_1 = arith.constant 0 : index
    %3 = vector.load %arg7[%c0, %c0_1] : memref<8x128xf32, #tpu.memory_space<vmem>>, vector<8x128xf32>
    %c0_2 = arith.constant 0 : index
    %c0_3 = arith.constant 0 : index
    %4 = vector.load %arg3[%c0_2, %c0_3] : memref<8x32xf32, #tpu.memory_space<vmem>>, vector<8x32xf32>
    %c0_4 = arith.constant 0 : index
    %c0_5 = arith.constant 0 : index
    %5 = vector.load %arg4[%c0_4, %c0_5] : memref<32x128xf32, #tpu.memory_space<vmem>>, vector<32x128xf32>
    %cst = arith.constant dense<0.000000e+00> : vector<8x128xf32>
    %6 = tpu.matmul %4, %5, %cst {dimension_numbers = #tpu.dot_dimension_numbers<[1], [0], [0], [1], [0, 0, 1, 1], [], []>} : vector<8x32xf32>, vector<32x128xf32>, vector<8x128xf32> -> vector<8x128xf32>
    %7 = arith.addf %3, %6 : vector<8x128xf32>
    %c0_6 = arith.constant 0 : index
    %c0_7 = arith.constant 0 : index
    %8 = vector.load %arg7[%c0_6, %c0_7] : memref<8x128xf32, #tpu.memory_space<vmem>>, vector<8x128xf32>
    tpu.vector_store %arg7[%c0_6, %c0_7], %7 {strides = array<i32>} : memref<8x128xf32, #tpu.memory_space<vmem>>, vector<8x128xf32>,
    %c0_i32_8 = arith.constant 0 : i32
    %9 = arith.cmpi eq, %arg2, %c0_i32_8 : i32
    %10 = arith.extui %9 : i1 to i32
    %c0_i32_9 = arith.constant 0 : i32
    %11 = arith.cmpi ne, %10, %c0_i32_9 : i32
    scf.if %11 {
      %c0_10 = arith.constant 0 : index
      %c0_11 = arith.constant 0 : index
      %12 = vector.load %arg7[%c0_10, %c0_11] : memref<8x128xf32, #tpu.memory_space<vmem>>, vector<8x128xf32>
      %c0_12 = arith.constant 0 : index
      %c0_13 = arith.constant 0 : index
      %13 = vector.load %arg6[%c0_12, %c0_13] : memref<8x128xf32, #tpu.memory_space<vmem>>, vector<8x128xf32>
      tpu.vector_store %arg6[%c0_12, %c0_13], %12 {strides = array<i32>} : memref<8x128xf32, #tpu.memory_space<vmem>>, vector<8x128xf32>,
    } else {
    }
    return
  }
  func.func @transform_0(%arg0: i32, %arg1: i32, %arg2: i32) -> (i32, i32) {
    %c0_i32 = arith.constant 0 : i32
    return %arg0, %arg2 : i32, i32
  }
  func.func @transform_1(%arg0: i32, %arg1: i32, %arg2: i32) -> (i32, i32) {
    %c0_i32 = arith.constant 0 : i32
    return %arg2, %arg1 : i32, i32
  }
  func.func @transform_2(%arg0: i32, %arg1: i32, %arg2: i32) -> (i32, i32) {
    %c0_i32 = arith.constant 0 : i32
    %c0_i32_0 = arith.constant 0 : i32
    return %c0_i32, %arg1 : i32, i32
  }
  func.func @transform_3(%arg0: i32, %arg1: i32, %arg2: i32) -> (i32, i32) {
    %c0_i32 = arith.constant 0 : i32
    return %arg0, %arg1 : i32, i32
  }
}

</mosaic_0001>

<bundles_post_ra>
// kernel: cls_forward.1
= control target key start
LH: loop header
LB: loop body
LE: loop exit
PB: predicated region body
PF: predicated region fallthrough
CT: control target
= control target key end

     0   :  { %8 = vsyncpa [#allocation4], 0  ;;  %s334_s0 = inlined_call_operand.hbm [shape: f32[8,32], index: 0, kind: input, shape index: {}]   ;;  %s335_s1 = inlined_call_operand.hbm [shape: f32[32,128], index: 1, kind: input, shape index: {}]   ;;  %s336_s2 = inlined_call_operand.vmem [shape: f32[1,128], index: 2, kind: input, shape index: {}]   ;;  %s337_s3 = inlined_call_operand.hbm [shape: f32[8,128], index: 3, kind: output, shape index: {}]  }
   0x1   :  { %9 = vsyncpa [#allocation7], 0 }
   0x2   :  { %10 = vsyncpa [#allocation5], 0  ;;  %s260_s12 = smov [#allocation3]   ;;  %s261_s14 = smov [#allocation6]  }
   0x3   :  { %s17_s13 = sshll.u32 %s260_s12, 4  ;;  %s26_s15 = sshll.u32 %s261_s14, 4  ;;  %s18_s13 = int_to_ptr.vmem [resolvable:$true] %s17_s13  ;;  %s288_s15 = int_to_ptr.vmem [resolvable:$true] %s26_s15 }
   0x4   :  { %s188_s18 = scalar_lea.hbm %s334_s0, 128 }
   0x5   :  { %p189_p0 = scmp.ne.s32.totalorder %s334_s0, %s188_s18  ;;  %p192_p1 = scmp.lt.u32.totalorder %s188_s18, %s334_s0 }
   0x7   :  { %p194_p2 = pnand %p192_p1, %p189_p0 }
   0x9   :  { %197 = shalt.err (!%p194_p2)
}
   0xa   :  { %s198_s23 = scalar_lea.vmem %s18_s13, 128  ;;  %p203_p4 = scmp.lt.s32.totalorder %s18_s13, %s18_s13 }
   0xb   :  { %p199_p3 = scmp.ne.s32.totalorder %s18_s13, %s198_s23  ;;  %p204_p5 = scmp.lt.s32.totalorder %s198_s23, %s198_s23 }
   0xd   :  { %p205_p6 = por %p204_p5, %p203_p4 }
   0xf   :  { %p206_p7 = pnand %p205_p6, %p199_p3 }
  0x11   :  { %209 = shalt.err (!%p206_p7)
}
  0x12   :  { %20 = dma.hbm_to_vmem [thread:$0]  %s334_s0, 128, %s18_s13, [#allocation4]  }
  0x13   :  { %s210_s28 = scalar_lea.hbm %s335_s1, 512 }
  0x14   :  { %p211_p8 = scmp.ne.s32.totalorder %s335_s1, %s210_s28  ;;  %p214_p9 = scmp.lt.u32.totalorder %s210_s28, %s335_s1 }
  0x16   :  { %p216_p10 = pnand %p214_p9, %p211_p8 }
  0x18   :  { %219 = shalt.err (!%p216_p10)
}
  0x19   :  { %s220_s6 = scalar_lea.vmem %s288_s15, 512  ;;  %p225_p12 = scmp.lt.s32.totalorder %s288_s15, %s288_s15 }
  0x1a   :  { %p221_p11 = scmp.ne.s32.totalorder %s288_s15, %s220_s6  ;;  %p226_p13 = scmp.lt.s32.totalorder %s220_s6, %s220_s6 }
  0x1c   :  { %p227_p0 = por %p226_p13, %p225_p12 }
  0x1e   :  { %p228_p1 = pnand %p227_p0, %p221_p11 }
  0x20   :  { %231 = shalt.err (!%p228_p1)
}
  0x21   :  { %s262_s0 = smov 128   ;;  %s263_s7 = smov 8  }
  0x22   :  { %32 = dma.hbm_to_vmem [thread:$0]  %s335_s1, 512, %s288_s15, [#allocation7], %s262_s0, %s262_s0, %s263_s7  }
  0x23   :  { %254 = dma.done.wait [#allocation4], 128  }
  0x24   :  { %255 = vsyncadd [#allocation4], 4294967168 }
  0x25   :  { %256 = dma.done.wait [#allocation7], 512  }
  0x26   :  { %257 = vsyncadd [#allocation7], 4294966784  ;;  %v264_v0 = vmov 0.0|0.0   ;;  %vm265_vm0 = vmmov 0   ;;  %v266_v1 = vmov 0.0   ;;  %v55_v2 = vld [vmem:[#allocation6] sm:$0xff] }
  0x27   :  { %174 = vmatprep.subr.bf16.mxu0 %v264_v0  ;;  %171 = vmatprep.mubr.msk.f32.mxu0 %vm265_vm0, %v266_v1  ;;  %v56_v3 = vld [vmem:[#allocation6 + $0x8] sm:$0xff]  ;;  %v57_v4 = vld [vmem:[#allocation6 + $0x10] sm:$0xff]  ;;  %v58_v6 = vld [vmem:[#allocation6 + $0x18] sm:$0xff]  ;;  %vm59_vm1 = vcmask 261120   ;;  %s267_s11 = smov [#allocation8]  }
  0x28   :  { %v175_v5 = vpack.c.bf16 %v56_v3, %v55_v2  ;;  %v178_v7 = vpack.c.bf16 %v58_v6, %v57_v4  ;;  %v54_v8 = vld [vmem:[#allocation3] sm:$0xff]  ;;  %s146_s12 = sshll.u32 %s267_s11, 4  ;;  %s147_s12 = int_to_ptr.vmem [resolvable:$true] %s146_s12 }
  0x29   :  { %v156_v9 = vld [vmem:[%s336_s2] ss:$0 sm:$0xff]  ;;  %s232_s13 = scalar_lea.vmem %s147_s12, 128  ;;  %p237_p3 = scmp.lt.s32.totalorder %s147_s12, %s147_s12 }
  0x2a   :  { %176 = vmatpush3.bf16.msra.mxu0 %v175_v5  ;;  %p233_p2 = scmp.ne.s32.totalorder %s147_s12, %s232_s13  ;;  %p238_p4 = scmp.lt.s32.totalorder %s232_s13, %s232_s13 }
  0x2b   :  { %177 = vmatprep.subr.bf16.mxu0 %v264_v0 }
  0x2c   :  { %p239_p5 = por %p238_p4, %p237_p3 }
  0x2e   :  { %179 = vmatpush3.bf16.msra.mxu0 %v178_v7  ;;  %p240_p6 = pnand %p239_p5, %p233_p2 }
  0x31   :  { %172 = vmatmul.mubr.msk.f32.vlgmr.msra.gmra.mrb[0].mxu0 %vm59_vm1, %v54_v8 }
 0x104   :  { %v129_v10 = vpop.f32.mrb[0].mxu0 }
 0x105   :  { %v133_v11 = vadd.f32 %v156_v9, %v129_v10  ;;  %v173_v12 = vpop.f32.mrb[1].mxu0 }
 0x107   :  { %139 = vst [vmem:[#allocation8] sm:$0xff] %v133_v11 }
 0x108   :  { %243 = shalt.err (!%p240_p6)
}
 0x109   :  { %s244_s16 = scalar_lea.hbm %s337_s3, 128 }
 0x10a   :  { %p245_p7 = scmp.ne.s32.totalorder %s337_s3, %s244_s16  ;;  %p248_p8 = scmp.lt.u32.totalorder %s244_s16, %s337_s3 }
 0x10c   :  { %p250_p9 = pnand %p248_p8, %p245_p7 }
 0x10e   :  { %253 = shalt.err (!%p250_p9)
}
 0x10f   :  { %149 = dma.vmem_to_hbm [thread:$0]  %s147_s12, 128, %s337_s3, [#allocation5]  }
 0x110   :  { %258 = dma.done.wait [#allocation5], 128  }
 0x111   :  { %259 = vsyncadd [#allocation5], 4294967168 }
 0x112   :  { %153 = vsyncpa [#allocation4], 1 }
 0x113   :  { %154 = vsyncpa [#allocation7], 1 }
 0x114   :  { %155 = vsyncpa [#allocation5], 1 }

</bundles_post_ra>
